<compile_context>
chip_gen: v7x
topology: tpu7x:2x2x1
jax: 0.10.0
libtpu: 0.0.40
codegen_flags: <defaults>
</compile_context>

<pallas_src>
import functools

import jax
import jax.numpy as jnp
from jax.experimental import pallas as pl
from jax.experimental.pallas import tpu as pltpu


# --------------------------------------------------------------------------- helpers
def _round_up(x, m):
    return (x + m - 1) // m * m


def _pick_tile(n, candidates):
    for c in candidates:
        if n % c == 0:
            return c
    return n


def _pick_batch_tile(Bp):
    # bt is either a multiple of 16 (bf16-tile friendly) or the full (padded) batch.
    return 16 if (Bp % 16 == 0) else Bp


def _pick_time_chunk(T, bt, Hp, vmem_budget=8 * 1024 * 1024):
    """VMEM-budget-driven time chunk (double-buffered gates_x f32 + hs bf16 blocks)."""
    per_step = bt * 4 * Hp * 4 * 2 + bt * Hp * 2 * 2
    cap = max(8, (vmem_budget // per_step) // 8 * 8)
    return int(min(_round_up(T, 8), cap))


def _sigmoid(x):
    # sigmoid via one tanh (1 EUP op) instead of exp + reciprocal (2 EUP ops);
    # the activations sit on the serial per-step chain of the recurrence.
    return 0.5 * jnp.tanh(0.5 * x) + 0.5


# --------------------------------------------------------------------------- kernel A: GEMM + bias
def matmul_bias_kernel(x_ref, w_ref, b_ref, o_ref):
    # x/w are bf16, accumulation + bias in f32.  dropout(eval) is identity.
    # TODO(synk): training-mode dropout (pltpu.prng_random_bits mask) not implemented.
    o_ref[...] = (jnp.dot(x_ref[...], w_ref[...], preferred_element_type=jnp.float32)
                  + b_ref[...])


def _gemm_bias(x2d, w, b):
    """(M, K) bf16 @ (K, N) bf16 + (1, N) f32 -> (M, N) f32; parallel lane-dense tiles."""
    M, K = x2d.shape
    _, N = w.shape
    tm = _pick_tile(M, (512, 256, 128, 64, 32, 16, 8))
    tn = _pick_tile(N, (2048, 1024, 512, 256, 128))
    # TODO(synk): add a K ('arbitrary') axis + f32 accumulator if K ever exceeds one block.
    return pl.pallas_call(
        matmul_bias_kernel,
        out_shape=jax.ShapeDtypeStruct((M, N), jnp.float32),
        grid_spec=pltpu.PrefetchScalarGridSpec(
            num_scalar_prefetch=0,
            grid=(M // tm, N // tn),
            in_specs=[
                pl.BlockSpec((tm, K), lambda m, n: (m, 0)),
                pl.BlockSpec((K, tn), lambda m, n: (0, n)),
                pl.BlockSpec((1, tn), lambda m, n: (0, n)),
            ],
            out_specs=pl.BlockSpec((tm, tn), lambda m, n: (m, n)),
        ),
        compiler_params=pltpu.CompilerParams(
            dimension_semantics=("parallel", "parallel"),
            vmem_limit_bytes=48 * 1024 * 1024),
    )(x2d, w, b)


# --------------------------------------------------------------------------- kernel B: recurrence
def lstm_kernel(gx_ref, h0_ref, c0_ref, whh_ref,
                hs_ref, hT_ref, cT_ref,
                hb_sc, c_sc, *, hidden_pad, t_chunk, seq_rem):
    """One grid step == one batch tile x one chunk of `t_chunk` LSTM time steps.

    gx_ref:  (t_chunk, bt, 4*Hp) f32  precomputed x@W_ih^T + b (time-major)
    h0/c0:   (bt, Hp) f32             initial state (read only at chunk 0)
    whh_ref: (Hp, 4*Hp) bf16          W_hh^T, gate order i,f,g,o, 128-padded gates
    hs_ref:  (t_chunk, bt, Hp) bf16   all hidden states of this chunk (time-major)
    hT/cT:   (bt, Hp) f32             final state (written at the last valid step)
    hb_sc:   bf16 h carry (matmul-input dtype); c_sc: f32 c carry
    """
    Hp = hidden_pad
    tc = pl.program_id(1)
    last_chunk = pl.num_programs(1) - 1

    @pl.when(tc == 0)
    def _():
        hb_sc[...] = h0_ref[...].astype(jnp.bfloat16)
        c_sc[...] = c0_ref[...]

    last_valid_i = (seq_rem - 1) if seq_rem else (t_chunk - 1)

    # Static (fully unrolled) loop over the chunk: whole chunk visible to the scheduler,
    # per-grid-step overhead paid once per t_chunk steps.
    for i in range(t_chunk):
        # Per-step MXU work is ONLY h_{t-1} @ W_hh (K = Hp); input projection + bias
        # were hoisted into the parallel GEMM that produced gx.
        gates = (jnp.dot(hb_sc[...], whh_ref[...], preferred_element_type=jnp.float32)
                 + gx_ref[i])                                   # (bt, 4*Hp) f32

        # Hp is a multiple of 128 -> every gate slice is a lane-aligned (zero-cost) view.
        i_g = _sigmoid(gates[:, 0 * Hp:1 * Hp])
        f_g = _sigmoid(gates[:, 1 * Hp:2 * Hp])
        g_g = jnp.tanh(gates[:, 2 * Hp:3 * Hp])
        o_g = _sigmoid(gates[:, 3 * Hp:4 * Hp])

        c_new = f_g * c_sc[...] + i_g * g_g
        h_new = o_g * jnp.tanh(c_new)
        h_bf = h_new.astype(jnp.bfloat16)

        # Time-major store: one aligned full-slab (bt, Hp) store per step.
        hs_ref[i] = h_bf

        if seq_rem and i >= seq_rem:
            # This step index is time padding only on the last chunk: skip the carry
            # update there so the final state comes from the last *valid* step.
            @pl.when(tc != last_chunk)
            def _():
                hb_sc[...] = h_bf
                c_sc[...] = c_new
        else:
            hb_sc[...] = h_bf
            c_sc[...] = c_new

        if i == last_valid_i:
            @pl.when(tc == last_chunk)
            def _():
                hT_ref[...] = h_new
                cT_ref[...] = c_new


# --------------------------------------------------------------------------- wrapper
def news_lstm_forward(x_ids, prev_state, params):
    """x_ids: (B, T) int32 token ids.  prev_state: (h0, c0), each (1, B, H) f32.
    Returns (logits (B, T, V) f32, (h_n, c_n))."""
    emb_table = params["embedding"]          # (V, E) f32
    w_ih_t = params["w_ih_t"]                # (E, 4H)
    w_hh_t = params["w_hh_t"]                # (H, 4H)
    b_all = params["b_all"]                  # (1, 4H)
    w_fc_t = params["w_fc_t"]                # (H, V)
    b_fc = params["b_fc"]                    # (1, V)

    h0, c0 = prev_state                      # (1, B, H) each
    B, T = x_ids.shape
    V, E = emb_table.shape
    H = h0.shape[-1]

    # hardware-friendly padded sizes
    Bp = _round_up(B, 8)
    Ep = _round_up(E, 128)
    Hp = _round_up(H, 128)
    Vp = _round_up(V, 128)

    bt = _pick_batch_tile(Bp)                # batch tile (leading 'parallel' axis)
    nb = Bp // bt
    t_chunk = _pick_time_chunk(T, bt, Hp)
    T_pad = _round_up(T, t_chunk)
    n_chunks = T_pad // t_chunk
    seq_rem = T % t_chunk

    # ---- embedding gather (plain JAX glue), time-major, bf16, zero-padded -----------
    emb_bf = emb_table.astype(jnp.bfloat16)
    embed_tm = jnp.take(emb_bf, x_ids.T, axis=0)                  # (T, B, E) bf16
    x_p = jnp.zeros((T_pad, Bp, Ep), jnp.bfloat16).at[:T, :B, :E].set(embed_tm)

    # ---- pack LSTM weights: per-gate 128-padding, bf16 ------------------------------
    def gate_pad(w):              # (rows, 4H) -> (rows, 4*Hp)
        return jnp.concatenate(
            [jnp.pad(w[:, k * H:(k + 1) * H], ((0, 0), (0, Hp - H)))
             for k in range(4)], axis=-1)

    w_ih_p = (jnp.zeros((Ep, 4 * Hp), jnp.float32)
              .at[:E].set(gate_pad(w_ih_t)).astype(jnp.bfloat16))
    w_hh_p = (jnp.zeros((Hp, 4 * Hp), jnp.float32)
              .at[:H].set(gate_pad(w_hh_t)).astype(jnp.bfloat16))
    b_gates = gate_pad(b_all)                                     # (1, 4*Hp) f32

    # ---- hoisted input projection: gates_x = x @ W_ih^T + (b_ih + b_hh) -------------
    gx2d = _gemm_bias(x_p.reshape(T_pad * Bp, Ep), w_ih_p, b_gates)
    gx = gx2d.reshape(T_pad, Bp, 4 * Hp)                          # (T_pad, Bp, 4Hp) f32

    h0_p = jnp.zeros((Bp, Hp), jnp.float32).at[:B, :H].set(h0[0])
    c0_p = jnp.zeros((Bp, Hp), jnp.float32).at[:B, :H].set(c0[0])

    kernel = functools.partial(lstm_kernel, hidden_pad=Hp, t_chunk=t_chunk,
                               seq_rem=seq_rem)

    # TODO(synk): single-buffer the constant-index inputs (whh, h0, c0) via
    # pipeline_mode=pl.Buffered(1) to save VMEM on v7x once that path is verified.
    hs, h_n_p, c_n_p = pl.pallas_call(
        kernel,
        out_shape=(
            jax.ShapeDtypeStruct((T_pad, Bp, Hp), jnp.bfloat16),  # all h_t, time-major
            jax.ShapeDtypeStruct((Bp, Hp), jnp.float32),          # h_T
            jax.ShapeDtypeStruct((Bp, Hp), jnp.float32),          # c_T
        ),
        grid_spec=pltpu.PrefetchScalarGridSpec(
            num_scalar_prefetch=0,
            grid=(nb, n_chunks),
            in_specs=[
                pl.BlockSpec((t_chunk, bt, 4 * Hp), lambda b, t: (t, b, 0)),  # gates_x
                pl.BlockSpec((bt, Hp), lambda b, t: (b, 0)),                  # h0
                pl.BlockSpec((bt, Hp), lambda b, t: (b, 0)),                  # c0
                pl.BlockSpec((Hp, 4 * Hp), lambda b, t: (0, 0)),              # W_hh^T
            ],
            out_specs=[
                pl.BlockSpec((t_chunk, bt, Hp), lambda b, t: (t, b, 0)),
                pl.BlockSpec((bt, Hp), lambda b, t: (b, 0)),
                pl.BlockSpec((bt, Hp), lambda b, t: (b, 0)),
            ],
            scratch_shapes=[
                pltpu.VMEM((bt, Hp), jnp.bfloat16),   # h carry (matmul-input dtype)
                pltpu.VMEM((bt, Hp), jnp.float32),    # c carry
            ],
        ),
        compiler_params=pltpu.CompilerParams(
            dimension_semantics=("parallel", "arbitrary"),        # batch ∥, time serial
            vmem_limit_bytes=48 * 1024 * 1024),
    )(gx, h0_p, c0_p, w_hh_p)

    # ---- hoisted FC projection on bf16 hidden states ---------------------------------
    w_fc_p = (jnp.zeros((Hp, Vp), jnp.float32)
              .at[:H, :V].set(w_fc_t).astype(jnp.bfloat16))
    b_fc_p = jnp.zeros((1, Vp), jnp.float32).at[:, :V].set(b_fc)

    # Reorder (T,B,H)->(B,T,H) on the small bf16 hidden states (never on V-sized logits).
    hs_bt = jnp.transpose(hs, (1, 0, 2))                           # (Bp, T_pad, Hp) bf16
    logits2d = _gemm_bias(hs_bt.reshape(Bp * T_pad, Hp), w_fc_p, b_fc_p)
    logits = logits2d.reshape(Bp, T_pad, Vp)[:B, :T, :V]           # batch-first

    h_n = h_n_p[:B, :H][None]
    c_n = c_n_p[:B, :H][None]
    return logits, (h_n, c_n)


# --------------------------------------------------------------------------- reference (pure JAX)
def news_lstm_reference(x_ids, prev_state, params):
    """Pure-JAX reference mirroring the kernel's bf16 rounding of weights / matmul inputs."""
    bf = lambda a: a.astype(jnp.bfloat16).astype(jnp.float32)
    emb = bf(jnp.take(params["embedding"], x_ids, axis=0))    # (B, T, E)
    wih = bf(params["w_ih_t"])
    whh = bf(params["w_hh_t"])
    wfc = bf(params["w_fc_t"])
    b_all = params["b_all"]
    b_fc = params["b_fc"]
    h = prev_state[0][0]
    c = prev_state[1][0]
    H = h.shape[-1]

    def step(carry, x_t):
        h, c = carry
        gates = x_t @ wih + bf(h) @ whh + b_all
        i = jax.nn.sigmoid(gates[:, 0 * H:1 * H])
        f = jax.nn.sigmoid(gates[:, 1 * H:2 * H])
        g = jnp.tanh(gates[:, 2 * H:3 * H])
        o = jax.nn.sigmoid(gates[:, 3 * H:4 * H])
        c = f * c + i * g
        h = o * jnp.tanh(c)
        return (h, c), h

    (h, c), hs = jax.lax.scan(step, (h, c), jnp.transpose(emb, (1, 0, 2)))
    hs = jnp.transpose(hs, (1, 0, 2))                          # (B, T, H)
    logits = bf(hs) @ wfc + b_fc
    return logits, (h[None], c[None])


# --------------------------------------------------------------------------- param init
def init_params(key, vocab_size, emb_dim, hidden_size, pad_idx=0):
    k_emb, k_wih, k_whh, k_bih, k_bhh, k_wfc, k_bfc = jax.random.split(key, 7)
    # nn.Embedding: N(0,1), padding_idx row zeroed
    emb = jax.random.normal(k_emb, (vocab_size, emb_dim), jnp.float32)
    emb = emb.at[pad_idx].set(0.0)
    # nn.LSTM / nn.Linear: U(-1/sqrt(H), 1/sqrt(H))
    bound = 1.0 / jnp.sqrt(hidden_size)
    w_ih = jax.random.uniform(k_wih, (4 * hidden_size, emb_dim), jnp.float32, -bound, bound)
    w_hh = jax.random.uniform(k_whh, (4 * hidden_size, hidden_size), jnp.float32, -bound, bound)
    b_ih = jax.random.uniform(k_bih, (4 * hidden_size,), jnp.float32, -bound, bound)
    b_hh = jax.random.uniform(k_bhh, (4 * hidden_size,), jnp.float32, -bound, bound)
    w_fc = jax.random.uniform(k_wfc, (vocab_size, hidden_size), jnp.float32, -bound, bound)
    b_fc = jax.random.uniform(k_bfc, (vocab_size,), jnp.float32, -bound, bound)
    return {
        "embedding": emb,
        "w_ih_t": w_ih.T,                    # (E, 4H), gate order i,f,g,o
        "w_hh_t": w_hh.T,                    # (H, 4H)
        "b_all": (b_ih + b_hh)[None, :],     # (1, 4H)
        "w_fc_t": w_fc.T,                    # (H, V)
        "b_fc": b_fc[None, :],               # (1, V)
    }


# --------------------------------------------------------------------------- main
if __name__ == "__main__":
    VOCAB, EMB, HIDDEN = 64, 48, 32
    BATCH, SEQ = 2, 32

    key = jax.random.PRNGKey(0)
    k_params, k_ids = jax.random.split(key)
    params = init_params(k_params, VOCAB, EMB, HIDDEN, pad_idx=0)

    x_ids = jax.random.randint(k_ids, (BATCH, SEQ), 0, VOCAB, dtype=jnp.int32)
    h0 = jnp.zeros((1, BATCH, HIDDEN), jnp.float32)
    c0 = jnp.zeros((1, BATCH, HIDDEN), jnp.float32)

    logits, (h_n, c_n) = news_lstm_forward(x_ids, (h0, c0), params)
    jax.block_until_ready((logits, h_n, c_n))

    # sanity check against pure-JAX reference (same bf16 quantization of weights/inputs)
    ref_logits, (ref_h, ref_c) = news_lstm_reference(x_ids, (h0, c0), params)
    assert logits.shape == (BATCH, SEQ, VOCAB)
    assert h_n.shape == (1, BATCH, HIDDEN) and c_n.shape == (1, BATCH, HIDDEN)
    assert jnp.allclose(logits, ref_logits, atol=2e-3, rtol=2e-3)
    assert jnp.allclose(h_n, ref_h, atol=2e-3, rtol=2e-3)
    assert jnp.allclose(c_n, ref_c, atol=2e-3, rtol=2e-3)

    print("KERNEL_OK")
</pallas_src>

<mosaic_0001>
module attributes {stable_mosaic.version = 11 : i64} {
  func.func @matmul_bias_kernel(%arg0: i32, %arg1: i32, %arg2: memref<256x128xbf16, #tpu.memory_space<vmem>>, %arg3: memref<128x512xbf16, #tpu.memory_space<vmem>>, %arg4: memref<1x512xf32, #tpu.memory_space<vmem>>, %arg5: memref<256x512xf32, #tpu.memory_space<vmem>>) attributes {dimension_semantics = [#tpu.dimension_semantics<parallel>, #tpu.dimension_semantics<parallel>], iteration_bounds = array<i64: 1, 1>, scalar_prefetch = 0 : i64, scratch_operands = 0 : i64, tpu.core_type = #tpu.core_type<tc>, window_params = [{transform_indices = @transform_0, window_bounds = array<i64: 256, 128>}, {transform_indices = @transform_1, window_bounds = array<i64: 128, 512>}, {transform_indices = @transform_2, window_bounds = array<i64: 1, 512>}, {transform_indices = @transform_3, window_bounds = array<i64: 256, 512>}]} {
    %c0 = arith.constant 0 : index
    %c0_0 = arith.constant 0 : index
    %0 = vector.load %arg2[%c0, %c0_0] : memref<256x128xbf16, #tpu.memory_space<vmem>>, vector<256x128xbf16>
    %c0_1 = arith.constant 0 : index
    %c0_2 = arith.constant 0 : index
    %1 = vector.load %arg3[%c0_1, %c0_2] : memref<128x512xbf16, #tpu.memory_space<vmem>>, vector<128x512xbf16>
    %cst = arith.constant dense<0.000000e+00> : vector<256x512xf32>
    %2 = tpu.matmul %0, %1, %cst {dimension_numbers = #tpu.dot_dimension_numbers<[1], [0], [0], [1], [0, 0, 1, 1], [], []>} : vector<256x128xbf16>, vector<128x512xbf16>, vector<256x512xf32> -> vector<256x512xf32>
    %c0_3 = arith.constant 0 : index
    %c0_4 = arith.constant 0 : index
    %3 = vector.load %arg4[%c0_3, %c0_4] : memref<1x512xf32, #tpu.memory_space<vmem>>, vector<1x512xf32>
    %4 = vector.broadcast %3 : vector<1x512xf32> to vector<256x512xf32>
    %5 = arith.addf %2, %4 : vector<256x512xf32>
    %c0_5 = arith.constant 0 : index
    %c0_6 = arith.constant 0 : index
    %6 = vector.load %arg5[%c0_5, %c0_6] : memref<256x512xf32, #tpu.memory_space<vmem>>, vector<256x512xf32>
    tpu.vector_store %arg5[%c0_5, %c0_6], %5 {strides = array<i32>} : memref<256x512xf32, #tpu.memory_space<vmem>>, vector<256x512xf32>,
    return
  }
  func.func @transform_0(%arg0: i32, %arg1: i32) -> (i32, i32) {
    %c0_i32 = arith.constant 0 : i32
    %c0_i32_0 = arith.constant 0 : i32
    return %arg0, %c0_i32 : i32, i32
  }
  func.func @transform_1(%arg0: i32, %arg1: i32) -> (i32, i32) {
    %c0_i32 = arith.constant 0 : i32
    %c0_i32_0 = arith.constant 0 : i32
    return %c0_i32, %arg1 : i32, i32
  }
  func.func @transform_2(%arg0: i32, %arg1: i32) -> (i32, i32) {
    %c0_i32 = arith.constant 0 : i32
    %c0_i32_0 = arith.constant 0 : i32
    return %c0_i32, %arg1 : i32, i32
  }
  func.func @transform_3(%arg0: i32, %arg1: i32) -> (i32, i32) {
    %c0_i32 = arith.constant 0 : i32
    return %arg0, %arg1 : i32, i32
  }
}

</mosaic_0001>

<bundles_post_ra>
// kernel: tpu_custom_call.1
= control target key start
LH: loop header
LB: loop body
LE: loop exit
PB: predicated region body
PF: predicated region fallthrough
CT: control target
= control target key end

     0   :  { %8 = vsyncpa [#allocation3], 0  ;;  %s1349_s0 = inlined_call_operand.hbm [shape: bf16[256,128], index: 0, kind: input, shape index: {}]   ;;  %s1350_s1 = inlined_call_operand.hbm [shape: bf16[128,512], index: 1, kind: input, shape index: {}]   ;;  %s1351_s2 = inlined_call_operand.vmem [shape: f32[1,512], index: 2, kind: input, shape index: {}]   ;;  %s1352_s3 = inlined_call_operand.hbm [shape: f32[256,512], index: 3, kind: output, shape index: {}]  }
   0x1   :  { %9 = vsyncpa [#allocation6], 0 }
   0x2   :  { %10 = vsyncpa [#allocation4], 0  ;;  %s1112_s12 = smov [#allocation2]   ;;  %s1040_s16 = scalar_lea.hbm %s1349_s0, 2048 }
   0x3   :  { %s16_s13 = sshll.u32 %s1112_s12, 4  ;;  %p1041_p0 = scmp.ne.s32.totalorder %s1349_s0, %s1040_s16  ;;  %s17_s13 = int_to_ptr.vmem [resolvable:$true] %s16_s13 }
   0x4   :  { %p1044_p1 = scmp.lt.u32.totalorder %s1040_s16, %s1349_s0 }
   0x6   :  { %p1046_p2 = pnand %p1044_p1, %p1041_p0 }
   0x8   :  { %1049 = shalt.err (!%p1046_p2)
}
   0x9   :  { %s1050_s21 = scalar_lea.vmem %s17_s13, 2048  ;;  %p1055_p4 = scmp.lt.s32.totalorder %s17_s13, %s17_s13 }
   0xa   :  { %p1051_p3 = scmp.ne.s32.totalorder %s17_s13, %s1050_s21  ;;  %p1056_p5 = scmp.lt.s32.totalorder %s1050_s21, %s1050_s21 }
   0xc   :  { %p1057_p6 = por %p1056_p5, %p1055_p4 }
   0xe   :  { %p1058_p7 = pnand %p1057_p6, %p1051_p3 }
  0x10   :  { %1061 = shalt.err (!%p1058_p7)
}
  0x11   :  { %s1113_s22 = smov 64   ;;  %s1114_s23 = smov 4  }
  0x12   :  { %22 = dma.hbm_to_vmem [thread:$0]  %s1349_s0, 2048, %s17_s13, [#allocation3], %s1113_s22, %s1113_s22, %s1114_s23  }
  0x13   :  { %s1115_s26 = smov [#allocation5]   ;;  %s1062_s30 = scalar_lea.hbm %s1350_s1, 4096 }
  0x14   :  { %s28_s27 = sshll.u32 %s1115_s26, 4  ;;  %p1063_p8 = scmp.ne.s32.totalorder %s1350_s1, %s1062_s30  ;;  %s29_s27 = int_to_ptr.vmem [resolvable:$true] %s28_s27 }
  0x15   :  { %p1066_p9 = scmp.lt.u32.totalorder %s1062_s30, %s1350_s1 }
  0x17   :  { %p1068_p10 = pnand %p1066_p9, %p1063_p8 }
  0x19   :  { %1071 = shalt.err (!%p1068_p10)
}
  0x1a   :  { %s1072_s8 = scalar_lea.vmem %s29_s27, 4096  ;;  %p1077_p12 = scmp.lt.s32.totalorder %s29_s27, %s29_s27 }
  0x1b   :  { %p1073_p11 = scmp.ne.s32.totalorder %s29_s27, %s1072_s8  ;;  %p1078_p13 = scmp.lt.s32.totalorder %s1072_s8, %s1072_s8 }
  0x1d   :  { %p1079_p0 = por %p1078_p13, %p1077_p12 }
  0x1f   :  { %p1080_p1 = pnand %p1079_p0, %p1073_p11 }
  0x21   :  { %1083 = shalt.err (!%p1080_p1)
}
  0x22   :  { %s1116_s0 = smov 256   ;;  %s1117_s9 = smov 16  }
  0x23   :  { %34 = dma.hbm_to_vmem [thread:$0]  %s1350_s1, 4096, %s29_s27, [#allocation6], %s1116_s0, %s1116_s0, %s1117_s9  }
  0x24   :  { %1106 = dma.done.wait [#allocation3], 2048  }
  0x25   :  { %1107 = vsyncadd [#allocation3], 4294965248 }
  0x26   :  { %1108 = dma.done.wait [#allocation6], 4096  }
  0x27   :  { %1109 = vsyncadd [#allocation6], 4294963200  ;;  %v1118_v0 = vmov 0   ;;  %v976_v1 = vld [vmem:[#allocation5 + $0x4] ss:$16 sps:$4 sm:$0xff]   ;;  %v1025_v34 = vld [vmem:[#allocation2 + $0x8] sm:$0xff]   ;;  %v110_v49 = vlaneseq }
  0x28   :  { %418 = vmatprep.mubr.bf16.mxu0 %v1118_v0  ;;  %611 = vmatprep.mubr.bf16.mxu1 %v1118_v0  ;;  %v978_v2 = vld [vmem:[#allocation5 + $0xc] ss:$16 sps:$4 sm:$0xff]   ;;  %v980_v3 = vld [vmem:[#allocation5] ss:$16 sps:$4 sm:$0xff]   ;;  %v981_v4 = vld [vmem:[#allocation5 + $0x8] ss:$16 sps:$4 sm:$0xff]  }
  0x29   :  { %386 = vmatprep.subr.bf16.mxu0 %v976_v1  ;;  %579 = vmatprep.subr.bf16.mxu1 %v978_v2  ;;  %v982_v5 = vld [vmem:[#allocation5 + $0x24] ss:$16 sps:$4 sm:$0xff]   ;;  %v984_v6 = vld [vmem:[#allocation5 + $0x2c] ss:$16 sps:$4 sm:$0xff]   ;;  %v986_v7 = vld [vmem:[#allocation5 + $0x20] ss:$16 sps:$4 sm:$0xff]  }
  0x2a   :  { %387 = vmatpush1.bf16.msra.mxu0 %v980_v3  ;;  %580 = vmatpush1.bf16.msra.mxu1 %v981_v4  ;;  %v987_v8 = vld [vmem:[#allocation5 + $0x28] ss:$16 sps:$4 sm:$0xff]   ;;  %v988_v9 = vld [vmem:[#allocation5 + $0x44] ss:$16 sps:$4 sm:$0xff]   ;;  %v990_v10 = vld [vmem:[#allocation5 + $0x4c] ss:$16 sps:$4 sm:$0xff]  }
  0x2b   :  { %388 = vmatprep.subr.bf16.mxu0 %v982_v5  ;;  %581 = vmatprep.subr.bf16.mxu1 %v984_v6  ;;  %v992_v11 = vld [vmem:[#allocation5 + $0x40] ss:$16 sps:$4 sm:$0xff]   ;;  %v993_v12 = vld [vmem:[#allocation5 + $0x48] ss:$16 sps:$4 sm:$0xff]   ;;  %v994_v13 = vld [vmem:[#allocation5 + $0x64] ss:$16 sps:$4 sm:$0xff]  }
  0x2c   :  { %v996_v14 = vld [vmem:[#allocation5 + $0x6c] ss:$16 sps:$4 sm:$0xff]   ;;  %v998_v15 = vld [vmem:[#allocation5 + $0x60] ss:$16 sps:$4 sm:$0xff]   ;;  %v999_v16 = vld [vmem:[#allocation5 + $0x68] ss:$16 sps:$4 sm:$0xff]  }
  0x2d   :  { %v1000_v17 = vld [vmem:[#allocation5 + $0x84] ss:$16 sps:$4 sm:$0xff]   ;;  %v1002_v18 = vld [vmem:[#allocation5 + $0x8c] ss:$16 sps:$4 sm:$0xff]   ;;  %v1004_v19 = vld [vmem:[#allocation5 + $0x80] ss:$16 sps:$4 sm:$0xff]  }
  0x2e   :  { %389 = vmatpush1.bf16.msra.mxu0 %v986_v7  ;;  %582 = vmatpush1.bf16.msra.mxu1 %v987_v8  ;;  %v1005_v20 = vld [vmem:[#allocation5 + $0x88] ss:$16 sps:$4 sm:$0xff]   ;;  %v1006_v21 = vld [vmem:[#allocation5 + $0xa4] ss:$16 sps:$4 sm:$0xff]   ;;  %v1008_v22 = vld [vmem:[#allocation5 + $0xac] ss:$16 sps:$4 sm:$0xff]  }
  0x2f   :  { %390 = vmatprep.subr.bf16.mxu0 %v988_v9  ;;  %583 = vmatprep.subr.bf16.mxu1 %v990_v10  ;;  %v1010_v23 = vld [vmem:[#allocation5 + $0xa0] ss:$16 sps:$4 sm:$0xff]   ;;  %v1011_v24 = vld [vmem:[#allocation5 + $0xa8] ss:$16 sps:$4 sm:$0xff]   ;;  %v1012_v25 = vld [vmem:[#allocation5 + $0xc4] ss:$16 sps:$4 sm:$0xff]  }
  0x30   :  { %v1014_v26 = vld [vmem:[#allocation5 + $0xcc] ss:$16 sps:$4 sm:$0xff]   ;;  %v1016_v27 = vld [vmem:[#allocation5 + $0xc0] ss:$16 sps:$4 sm:$0xff]   ;;  %v1017_v28 = vld [vmem:[#allocation5 + $0xc8] ss:$16 sps:$4 sm:$0xff]  }
  0x31   :  { %v1018_v29 = vld [vmem:[#allocation5 + $0xe4] ss:$16 sps:$4 sm:$0xff]   ;;  %v1020_v30 = vld [vmem:[#allocation5 + $0xec] ss:$16 sps:$4 sm:$0xff]   ;;  %v1022_v31 = vld [vmem:[#allocation5 + $0xe0] ss:$16 sps:$4 sm:$0xff]  }
  0x32   :  { %391 = vmatpush1.bf16.msra.mxu0 %v992_v11  ;;  %584 = vmatpush1.bf16.msra.mxu1 %v993_v12  ;;  %v1023_v32 = vld [vmem:[#allocation5 + $0xe8] ss:$16 sps:$4 sm:$0xff]   ;;  %v1024_v33 = vld [vmem:[#allocation2] sm:$0xff]   ;;  %v1026_v35 = vld [vmem:[#allocation2 + $0x10] sm:$0xff]   ;;  %v111_v50 = vshrl.u32 %v110_v49, 7 }
  0x33   :  { %392 = vmatprep.subr.bf16.mxu0 %v994_v13  ;;  %585 = vmatprep.subr.bf16.mxu1 %v996_v14  ;;  %v1027_v36 = vld [vmem:[#allocation2 + $0x18] sm:$0xff]   ;;  %v1028_v37 = vld [vmem:[#allocation2 + $0x20] sm:$0xff]   ;;  %v1029_v38 = vld [vmem:[#allocation2 + $0x28] sm:$0xff]  }
  0x34   :  { %v1030_v39 = vld [vmem:[#allocation2 + $0x30] sm:$0xff]   ;;  %v1031_v40 = vld [vmem:[#allocation2 + $0x38] sm:$0xff]   ;;  %v1032_v41 = vld [vmem:[#allocation2 + $0x40] sm:$0xff]   ;;  %v112_v51 = vsub.s32 0, %v111_v50  ;;  %v120_v52 = vsub.s32 2, %v111_v50  ;;  %v116_v54 = vsub.s32 1, %v111_v50 }
  0x35   :  { %v1033_v42 = vld [vmem:[#allocation2 + $0x48] sm:$0xff]   ;;  %v1034_v43 = vld [vmem:[#allocation2 + $0x50] sm:$0xff]   ;;  %v1035_v44 = vld [vmem:[#allocation2 + $0x58] sm:$0xff]   ;;  %v124_v55 = vsub.s32 3, %v111_v50 }
  0x36   :  { %393 = vmatpush1.bf16.msra.mxu0 %v998_v15  ;;  %586 = vmatpush1.bf16.msra.mxu1 %v999_v16  ;;  %v1036_v45 = vld [vmem:[#allocation2 + $0x60] sm:$0xff]   ;;  %v1037_v46 = vld [vmem:[#allocation2 + $0x68] sm:$0xff]   ;;  %v1038_v47 = vld [vmem:[#allocation2 + $0x70] sm:$0xff]  }
  0x37   :  { %394 = vmatprep.subr.bf16.mxu0 %v1000_v17  ;;  %587 = vmatprep.subr.bf16.mxu1 %v1002_v18  ;;  %v1039_v48 = vld [vmem:[#allocation2 + $0x78] sm:$0xff]   ;;  %v108_v53 = vld [vmem:[%s1351_s2] sm:$0xf]  ;;  %s1119_s2 = smov [#allocation7]  }
  0x38   :  { %v1201_v56 = vrot.slane %v108_v53, %v112_v51  ;;  %v1203_v57 = vrot.slane %v108_v53, %v120_v52  ;;  %v1205_v58 = vrot.slane %v108_v53, %v116_v54  ;;  %v1207_v59 = vrot.slane %v108_v53, %v124_v55  ;;  %s905_s13 = sshll.u32 %s1119_s2, 4  ;;  %s906_s13 = int_to_ptr.vmem [resolvable:$true] %s905_s13 }
  0x39   :  { %s1084_s14 = scalar_lea.vmem %s906_s13, 16384  ;;  %p1089_p3 = scmp.lt.s32.totalorder %s906_s13, %s906_s13 }
  0x3a   :  { %395 = vmatpush1.bf16.msra.mxu0 %v1004_v19  ;;  %588 = vmatpush1.bf16.msra.mxu1 %v1005_v20  ;;  %p1085_p2 = scmp.ne.s32.totalorder %s906_s13, %s1084_s14  ;;  %p1090_p4 = scmp.lt.s32.totalorder %s1084_s14, %s1084_s14 }
  0x3b   :  { %396 = vmatprep.subr.bf16.mxu0 %v1006_v21  ;;  %589 = vmatprep.subr.bf16.mxu1 %v1008_v22 }
  0x3c   :  { %p1091_p5 = por %p1090_p4, %p1089_p3 }
  0x3e   :  { %397 = vmatpush1.bf16.msra.mxu0 %v1010_v23  ;;  %590 = vmatpush1.bf16.msra.mxu1 %v1011_v24  ;;  %p1092_p6 = pnand %p1091_p5, %p1085_p2 }
  0x3f   :  { %398 = vmatprep.subr.bf16.mxu0 %v1012_v25  ;;  %591 = vmatprep.subr.bf16.mxu1 %v1014_v26 }
  0x42   :  { %399 = vmatpush1.bf16.msra.mxu0 %v1016_v27  ;;  %592 = vmatpush1.bf16.msra.mxu1 %v1017_v28 }
  0x43   :  { %400 = vmatprep.subr.bf16.mxu0 %v1018_v29  ;;  %593 = vmatprep.subr.bf16.mxu1 %v1020_v30 }
  0x46   :  { %401 = vmatpush1.bf16.msra.mxu0 %v1022_v31  ;;  %594 = vmatpush1.bf16.msra.mxu1 %v1023_v32 }
  0x49   :  { %419 = vmatmul.mubr.bf16.vlgmr.msra.gmra.mrb[0].mxu0 %v1024_v33  ;;  %612 = vmatmul.mubr.bf16.vlgmr.msra.gmra.mrb[0].mxu1 %v1024_v33 }
  0x4a   :  { %428 = vmatprep.mubr.bf16.mxu0 %v1118_v0  ;;  %621 = vmatprep.mubr.bf16.mxu1 %v1118_v0 }
  0x51   :  { %429 = vmatmul.mubr.bf16.gmra.mrb[4].mxu0 %v1025_v34  ;;  %622 = vmatmul.mubr.bf16.gmra.mrb[4].mxu1 %v1025_v34 }
  0x52   :  { %438 = vmatprep.mubr.bf16.mxu0 %v1118_v0  ;;  %631 = vmatprep.mubr.bf16.mxu1 %v1118_v0 }
  0x59   :  { %439 = vmatmul.mubr.bf16.gmra.mrb[8].mxu0 %v1026_v35  ;;  %632 = vmatmul.mubr.bf16.gmra.mrb[8].mxu1 %v1026_v35 }
  0x5a   :  { %448 = vmatprep.mubr.bf16.mxu0 %v1118_v0  ;;  %641 = vmatprep.mubr.bf16.mxu1 %v1118_v0 }
  0x61   :  { %449 = vmatmul.mubr.bf16.gmra.mrb[12].mxu0 %v1027_v36  ;;  %642 = vmatmul.mubr.bf16.gmra.mrb[12].mxu1 %v1027_v36 }
  0x62   :  { %458 = vmatprep.mubr.bf16.mxu0 %v1118_v0  ;;  %651 = vmatprep.mubr.bf16.mxu1 %v1118_v0 }
  0x69   :  { %459 = vmatmul.mubr.bf16.gmra.mrb[16].mxu0 %v1028_v37  ;;  %652 = vmatmul.mubr.bf16.gmra.mrb[16].mxu1 %v1028_v37 }
  0x6a   :  { %468 = vmatprep.mubr.bf16.mxu0 %v1118_v0  ;;  %661 = vmatprep.mubr.bf16.mxu1 %v1118_v0 }
  0x71   :  { %469 = vmatmul.mubr.bf16.gmra.mrb[20].mxu0 %v1029_v38  ;;  %662 = vmatmul.mubr.bf16.gmra.mrb[20].mxu1 %v1029_v38 }
  0x72   :  { %478 = vmatprep.mubr.bf16.mxu0 %v1118_v0  ;;  %671 = vmatprep.mubr.bf16.mxu1 %v1118_v0 }
  0x79   :  { %479 = vmatmul.mubr.bf16.gmra.mrb[24].mxu0 %v1030_v39  ;;  %672 = vmatmul.mubr.bf16.gmra.mrb[24].mxu1 %v1030_v39 }
  0x7a   :  { %488 = vmatprep.mubr.bf16.mxu0 %v1118_v0  ;;  %681 = vmatprep.mubr.bf16.mxu1 %v1118_v0 }
  0x81   :  { %489 = vmatmul.mubr.bf16.gmra.mrb[28].mxu0 %v1031_v40  ;;  %682 = vmatmul.mubr.bf16.gmra.mrb[28].mxu1 %v1031_v40 }
  0x82   :  { %498 = vmatprep.mubr.bf16.mxu0 %v1118_v0  ;;  %691 = vmatprep.mubr.bf16.mxu1 %v1118_v0 }
  0x89   :  { %499 = vmatmul.mubr.bf16.gmra.mrb[32].mxu0 %v1032_v41  ;;  %692 = vmatmul.mubr.bf16.gmra.mrb[32].mxu1 %v1032_v41 }
  0x8a   :  { %508 = vmatprep.mubr.bf16.mxu0 %v1118_v0  ;;  %701 = vmatprep.mubr.bf16.mxu1 %v1118_v0 }
  0x91   :  { %509 = vmatmul.mubr.bf16.gmra.mrb[36].mxu0 %v1033_v42  ;;  %702 = vmatmul.mubr.bf16.gmra.mrb[36].mxu1 %v1033_v42 }
  0x92   :  { %518 = vmatprep.mubr.bf16.mxu0 %v1118_v0  ;;  %711 = vmatprep.mubr.bf16.mxu1 %v1118_v0 }
  0x99   :  { %519 = vmatmul.mubr.bf16.gmra.mrb[40].mxu0 %v1034_v43  ;;  %712 = vmatmul.mubr.bf16.gmra.mrb[40].mxu1 %v1034_v43 }
  0x9a   :  { %528 = vmatprep.mubr.bf16.mxu0 %v1118_v0  ;;  %721 = vmatprep.mubr.bf16.mxu1 %v1118_v0 }
  0xa1   :  { %529 = vmatmul.mubr.bf16.gmra.mrb[44].mxu0 %v1035_v44  ;;  %722 = vmatmul.mubr.bf16.gmra.mrb[44].mxu1 %v1035_v44 }
  0xa2   :  { %538 = vmatprep.mubr.bf16.mxu0 %v1118_v0  ;;  %731 = vmatprep.mubr.bf16.mxu1 %v1118_v0 }
  0xa9   :  { %539 = vmatmul.mubr.bf16.gmra.mrb[48].mxu0 %v1036_v45  ;;  %732 = vmatmul.mubr.bf16.gmra.mrb[48].mxu1 %v1036_v45 }
  0xaa   :  { %548 = vmatprep.mubr.bf16.mxu0 %v1118_v0  ;;  %741 = vmatprep.mubr.bf16.mxu1 %v1118_v0 }
  0xb1   :  { %549 = vmatmul.mubr.bf16.gmra.mrb[52].mxu0 %v1037_v46  ;;  %742 = vmatmul.mubr.bf16.gmra.mrb[52].mxu1 %v1037_v46 }
  0xb2   :  { %558 = vmatprep.mubr.bf16.mxu0 %v1118_v0  ;;  %751 = vmatprep.mubr.bf16.mxu1 %v1118_v0 }
  0xb9   :  { %559 = vmatmul.mubr.bf16.gmra.mrb[56].mxu0 %v1038_v47  ;;  %752 = vmatmul.mubr.bf16.gmra.mrb[56].mxu1 %v1038_v47 }
  0xba   :  { %568 = vmatprep.mubr.bf16.mxu0 %v1118_v0  ;;  %761 = vmatprep.mubr.bf16.mxu1 %v1118_v0 }
  0xc1   :  { %569 = vmatmul.mubr.bf16.gmra.mrb[60].mxu0 %v1039_v48  ;;  %762 = vmatmul.mubr.bf16.gmra.mrb[60].mxu1 %v1039_v48 }
 0x11c   :  { %v420_v60 = vpop.f32.mrb[0].mxu0  ;;  %v613_v61 = vpop.f32.mrb[0].mxu1 }
 0x11d   :  { %v421_v62 = vadd.f32 %v420_v60, %v1201_v56  ;;  %v614_v63 = vadd.f32 %v613_v61, %v1203_v57  ;;  %v422_v0 = vpop.f32.mrb[1].mxu0  ;;  %v615_v1 = vpop.f32.mrb[1].mxu1 }
 0x11e   :  { %v423_v2 = vadd.f32 %v422_v0, %v1205_v58  ;;  %v616_v3 = vadd.f32 %v615_v1, %v1207_v59  ;;  %v424_v4 = vpop.f32.mrb[2].mxu0  ;;  %v617_v5 = vpop.f32.mrb[2].mxu1 }
 0x11f   :  { %772 = vst [vmem:[#allocation7] sm:$0xff] %v421_v62  ;;  %774 = vst [vmem:[#allocation7 + $0x10] sm:$0xff] %v614_v63  ;;  %v425_v6 = vadd.f32 %v424_v4, %v1201_v56  ;;  %v618_v7 = vadd.f32 %v617_v5, %v1203_v57  ;;  %v426_v8 = vpop.f32.mrb[3].mxu0  ;;  %v619_v9 = vpop.f32.mrb[3].mxu1 }
 0x120   :  { %773 = vst [vmem:[#allocation7 + $0x8] sm:$0xff] %v423_v2  ;;  %775 = vst [vmem:[#allocation7 + $0x18] sm:$0xff] %v616_v3  ;;  %v427_v10 = vadd.f32 %v426_v8, %v1205_v58  ;;  %v620_v11 = vadd.f32 %v619_v9, %v1207_v59 }
 0x121   :  { %776 = vst [vmem:[#allocation7 + $0x20] sm:$0xff] %v425_v6  ;;  %778 = vst [vmem:[#allocation7 + $0x30] sm:$0xff] %v618_v7 }
 0x122   :  { %777 = vst [vmem:[#allocation7 + $0x28] sm:$0xff] %v427_v10  ;;  %779 = vst [vmem:[#allocation7 + $0x38] sm:$0xff] %v620_v11 }
 0x124   :  { %v430_v12 = vpop.f32.mrb[4].mxu0  ;;  %v623_v13 = vpop.f32.mrb[4].mxu1 }
 0x125   :  { %v431_v14 = vadd.f32 %v430_v12, %v1201_v56  ;;  %v624_v15 = vadd.f32 %v623_v13, %v1203_v57  ;;  %v432_v16 = vpop.f32.mrb[5].mxu0  ;;  %v625_v17 = vpop.f32.mrb[5].mxu1 }
 0x126   :  { %v433_v18 = vadd.f32 %v432_v16, %v1205_v58  ;;  %v626_v19 = vadd.f32 %v625_v17, %v1207_v59  ;;  %v434_v20 = vpop.f32.mrb[6].mxu0  ;;  %v627_v21 = vpop.f32.mrb[6].mxu1 }
 0x127   :  { %780 = vst [vmem:[#allocation7 + $0x40] sm:$0xff] %v431_v14  ;;  %782 = vst [vmem:[#allocation7 + $0x50] sm:$0xff] %v624_v15  ;;  %v435_v22 = vadd.f32 %v434_v20, %v1201_v56  ;;  %v628_v23 = vadd.f32 %v627_v21, %v1203_v57  ;;  %v436_v24 = vpop.f32.mrb[7].mxu0  ;;  %v629_v25 = vpop.f32.mrb[7].mxu1 }
 0x128   :  { %781 = vst [vmem:[#allocation7 + $0x48] sm:$0xff] %v433_v18  ;;  %783 = vst [vmem:[#allocation7 + $0x58] sm:$0xff] %v626_v19  ;;  %v437_v26 = vadd.f32 %v436_v24, %v1205_v58  ;;  %v630_v27 = vadd.f32 %v629_v25, %v1207_v59 }
 0x129   :  { %784 = vst [vmem:[#allocation7 + $0x60] sm:$0xff] %v435_v22  ;;  %786 = vst [vmem:[#allocation7 + $0x70] sm:$0xff] %v628_v23 }
 0x12a   :  { %785 = vst [vmem:[#allocation7 + $0x68] sm:$0xff] %v437_v26  ;;  %787 = vst [vmem:[#allocation7 + $0x78] sm:$0xff] %v630_v27 }
 0x12c   :  { %v440_v28 = vpop.f32.mrb[8].mxu0  ;;  %v633_v29 = vpop.f32.mrb[8].mxu1 }
 0x12d   :  { %v441_v30 = vadd.f32 %v440_v28, %v1201_v56  ;;  %v634_v31 = vadd.f32 %v633_v29, %v1203_v57  ;;  %v442_v32 = vpop.f32.mrb[9].mxu0  ;;  %v635_v33 = vpop.f32.mrb[9].mxu1 }
 0x12e   :  { %v443_v34 = vadd.f32 %v442_v32, %v1205_v58  ;;  %v636_v35 = vadd.f32 %v635_v33, %v1207_v59  ;;  %v444_v36 = vpop.f32.mrb[10].mxu0  ;;  %v637_v37 = vpop.f32.mrb[10].mxu1 }
 0x12f   :  { %788 = vst [vmem:[#allocation7 + $0x80] sm:$0xff] %v441_v30  ;;  %790 = vst [vmem:[#allocation7 + $0x90] sm:$0xff] %v634_v31  ;;  %v445_v38 = vadd.f32 %v444_v36, %v1201_v56  ;;  %v638_v39 = vadd.f32 %v637_v37, %v1203_v57  ;;  %v446_v40 = vpop.f32.mrb[11].mxu0  ;;  %v639_v41 = vpop.f32.mrb[11].mxu1 }
 0x130   :  { %789 = vst [vmem:[#allocation7 + $0x88] sm:$0xff] %v443_v34  ;;  %791 = vst [vmem:[#allocation7 + $0x98] sm:$0xff] %v636_v35  ;;  %v447_v42 = vadd.f32 %v446_v40, %v1205_v58  ;;  %v640_v43 = vadd.f32 %v639_v41, %v1207_v59 }
 0x131   :  { %792 = vst [vmem:[#allocation7 + $0xa0] sm:$0xff] %v445_v38  ;;  %794 = vst [vmem:[#allocation7 + $0xb0] sm:$0xff] %v638_v39 }
 0x132   :  { %793 = vst [vmem:[#allocation7 + $0xa8] sm:$0xff] %v447_v42  ;;  %795 = vst [vmem:[#allocation7 + $0xb8] sm:$0xff] %v640_v43 }
 0x134   :  { %v450_v44 = vpop.f32.mrb[12].mxu0  ;;  %v643_v45 = vpop.f32.mrb[12].mxu1 }
 0x135   :  { %v451_v46 = vadd.f32 %v450_v44, %v1201_v56  ;;  %v644_v47 = vadd.f32 %v643_v45, %v1203_v57  ;;  %v452_v48 = vpop.f32.mrb[13].mxu0  ;;  %v645_v49 = vpop.f32.mrb[13].mxu1 }
 0x136   :  { %v453_v50 = vadd.f32 %v452_v48, %v1205_v58  ;;  %v646_v51 = vadd.f32 %v645_v49, %v1207_v59  ;;  %v454_v52 = vpop.f32.mrb[14].mxu0  ;;  %v647_v53 = vpop.f32.mrb[14].mxu1 }
 0x137   :  { %796 = vst [vmem:[#allocation7 + $0xc0] sm:$0xff] %v451_v46  ;;  %798 = vst [vmem:[#allocation7 + $0xd0] sm:$0xff] %v644_v47  ;;  %v455_v54 = vadd.f32 %v454_v52, %v1201_v56  ;;  %v648_v55 = vadd.f32 %v647_v53, %v1203_v57  ;;  %v456_v60 = vpop.f32.mrb[15].mxu0  ;;  %v649_v61 = vpop.f32.mrb[15].mxu1 }
 0x138   :  { %797 = vst [vmem:[#allocation7 + $0xc8] sm:$0xff] %v453_v50  ;;  %799 = vst [vmem:[#allocation7 + $0xd8] sm:$0xff] %v646_v51  ;;  %v457_v62 = vadd.f32 %v456_v60, %v1205_v58  ;;  %v650_v63 = vadd.f32 %v649_v61, %v1207_v59 }
 0x139   :  { %800 = vst [vmem:[#allocation7 + $0xe0] sm:$0xff] %v455_v54  ;;  %802 = vst [vmem:[#allocation7 + $0xf0] sm:$0xff] %v648_v55 }
 0x13a   :  { %801 = vst [vmem:[#allocation7 + $0xe8] sm:$0xff] %v457_v62  ;;  %803 = vst [vmem:[#allocation7 + $0xf8] sm:$0xff] %v650_v63 }
 0x13c   :  { %v460_v0 = vpop.f32.mrb[16].mxu0  ;;  %v653_v1 = vpop.f32.mrb[16].mxu1 }
 0x13d   :  { %v461_v2 = vadd.f32 %v460_v0, %v1201_v56  ;;  %v654_v3 = vadd.f32 %v653_v1, %v1203_v57  ;;  %v462_v4 = vpop.f32.mrb[17].mxu0  ;;  %v655_v5 = vpop.f32.mrb[17].mxu1 }
 0x13e   :  { %v463_v6 = vadd.f32 %v462_v4, %v1205_v58  ;;  %v656_v7 = vadd.f32 %v655_v5, %v1207_v59  ;;  %v464_v8 = vpop.f32.mrb[18].mxu0  ;;  %v657_v9 = vpop.f32.mrb[18].mxu1 }
 0x13f   :  { %804 = vst [vmem:[#allocation7 + $0x100] sm:$0xff] %v461_v2  ;;  %806 = vst [vmem:[#allocation7 + $0x110] sm:$0xff] %v654_v3  ;;  %v465_v10 = vadd.f32 %v464_v8, %v1201_v56  ;;  %v658_v11 = vadd.f32 %v657_v9, %v1203_v57  ;;  %v466_v12 = vpop.f32.mrb[19].mxu0  ;;  %v659_v13 = vpop.f32.mrb[19].mxu1 }
 0x140   :  { %805 = vst [vmem:[#allocation7 + $0x108] sm:$0xff] %v463_v6  ;;  %807 = vst [vmem:[#allocation7 + $0x118] sm:$0xff] %v656_v7  ;;  %v467_v14 = vadd.f32 %v466_v12, %v1205_v58  ;;  %v660_v15 = vadd.f32 %v659_v13, %v1207_v59 }
 0x141   :  { %808 = vst [vmem:[#allocation7 + $0x120] sm:$0xff] %v465_v10  ;;  %810 = vst [vmem:[#allocation7 + $0x130] sm:$0xff] %v658_v11 }
 0x142   :  { %809 = vst [vmem:[#allocation7 + $0x128] sm:$0xff] %v467_v14  ;;  %811 = vst [vmem:[#allocation7 + $0x138] sm:$0xff] %v660_v15 }
 0x144   :  { %v470_v16 = vpop.f32.mrb[20].mxu0  ;;  %v663_v17 = vpop.f32.mrb[20].mxu1 }
 0x145   :  { %v471_v18 = vadd.f32 %v470_v16, %v1201_v56  ;;  %v664_v19 = vadd.f32 %v663_v17, %v1203_v57  ;;  %v472_v20 = vpop.f32.mrb[21].mxu0  ;;  %v665_v21 = vpop.f32.mrb[21].mxu1 }
 0x146   :  { %v473_v22 = vadd.f32 %v472_v20, %v1205_v58  ;;  %v666_v23 = vadd.f32 %v665_v21, %v1207_v59  ;;  %v474_v24 = vpop.f32.mrb[22].mxu0  ;;  %v667_v25 = vpop.f32.mrb[22].mxu1 }
 0x147   :  { %812 = vst [vmem:[#allocation7 + $0x140] sm:$0xff] %v471_v18  ;;  %814 = vst [vmem:[#allocation7 + $0x150] sm:$0xff] %v664_v19  ;;  %v475_v26 = vadd.f32 %v474_v24, %v1201_v56  ;;  %v668_v27 = vadd.f32 %v667_v25, %v1203_v57  ;;  %v476_v28 = vpop.f32.mrb[23].mxu0  ;;  %v669_v29 = vpop.f32.mrb[23].mxu1 }
 0x148   :  { %813 = vst [vmem:[#allocation7 + $0x148] sm:$0xff] %v473_v22  ;;  %815 = vst [vmem:[#allocation7 + $0x158] sm:$0xff] %v666_v23  ;;  %v477_v30 = vadd.f32 %v476_v28, %v1205_v58  ;;  %v670_v31 = vadd.f32 %v669_v29, %v1207_v59 }
 0x149   :  { %816 = vst [vmem:[#allocation7 + $0x160] sm:$0xff] %v475_v26  ;;  %818 = vst [vmem:[#allocation7 + $0x170] sm:$0xff] %v668_v27 }
 0x14a   :  { %817 = vst [vmem:[#allocation7 + $0x168] sm:$0xff] %v477_v30  ;;  %819 = vst [vmem:[#allocation7 + $0x178] sm:$0xff] %v670_v31 }
 0x14c   :  { %v480_v32 = vpop.f32.mrb[24].mxu0  ;;  %v673_v33 = vpop.f32.mrb[24].mxu1 }
 0x14d   :  { %v481_v34 = vadd.f32 %v480_v32, %v1201_v56  ;;  %v674_v35 = vadd.f32 %v673_v33, %v1203_v57  ;;  %v482_v36 = vpop.f32.mrb[25].mxu0  ;;  %v675_v37 = vpop.f32.mrb[25].mxu1 }
 0x14e   :  { %v483_v38 = vadd.f32 %v482_v36, %v1205_v58  ;;  %v676_v39 = vadd.f32 %v675_v37, %v1207_v59  ;;  %v484_v40 = vpop.f32.mrb[26].mxu0  ;;  %v677_v41 = vpop.f32.mrb[26].mxu1 }
 0x14f   :  { %820 = vst [vmem:[#allocation7 + $0x180] sm:$0xff] %v481_v34  ;;  %822 = vst [vmem:[#allocation7 + $0x190] sm:$0xff] %v674_v35  ;;  %v485_v42 = vadd.f32 %v484_v40, %v1201_v56  ;;  %v678_v43 = vadd.f32 %v677_v41, %v1203_v57  ;;  %v486_v44 = vpop.f32.mrb[27].mxu0  ;;  %v679_v45 = vpop.f32.mrb[27].mxu1 }
 0x150   :  { %821 = vst [vmem:[#allocation7 + $0x188] sm:$0xff] %v483_v38  ;;  %823 = vst [vmem:[#allocation7 + $0x198] sm:$0xff] %v676_v39  ;;  %v487_v46 = vadd.f32 %v486_v44, %v1205_v58  ;;  %v680_v47 = vadd.f32 %v679_v45, %v1207_v59 }
 0x151   :  { %824 = vst [vmem:[#allocation7 + $0x1a0] sm:$0xff] %v485_v42  ;;  %826 = vst [vmem:[#allocation7 + $0x1b0] sm:$0xff] %v678_v43 }
 0x152   :  { %825 = vst [vmem:[#allocation7 + $0x1a8] sm:$0xff] %v487_v46  ;;  %827 = vst [vmem:[#allocation7 + $0x1b8] sm:$0xff] %v680_v47 }
 0x154   :  { %v490_v48 = vpop.f32.mrb[28].mxu0  ;;  %v683_v49 = vpop.f32.mrb[28].mxu1 }
 0x155   :  { %v491_v50 = vadd.f32 %v490_v48, %v1201_v56  ;;  %v684_v51 = vadd.f32 %v683_v49, %v1203_v57  ;;  %v492_v52 = vpop.f32.mrb[29].mxu0  ;;  %v685_v53 = vpop.f32.mrb[29].mxu1 }
 0x156   :  { %v493_v54 = vadd.f32 %v492_v52, %v1205_v58  ;;  %v686_v55 = vadd.f32 %v685_v53, %v1207_v59  ;;  %v494_v60 = vpop.f32.mrb[30].mxu0  ;;  %v687_v61 = vpop.f32.mrb[30].mxu1 }
 0x157   :  { %828 = vst [vmem:[#allocation7 + $0x1c0] sm:$0xff] %v491_v50  ;;  %830 = vst [vmem:[#allocation7 + $0x1d0] sm:$0xff] %v684_v51  ;;  %v495_v62 = vadd.f32 %v494_v60, %v1201_v56  ;;  %v688_v63 = vadd.f32 %v687_v61, %v1203_v57  ;;  %v496_v0 = vpop.f32.mrb[31].mxu0  ;;  %v689_v1 = vpop.f32.mrb[31].mxu1 }
 0x158   :  { %829 = vst [vmem:[#allocation7 + $0x1c8] sm:$0xff] %v493_v54  ;;  %831 = vst [vmem:[#allocation7 + $0x1d8] sm:$0xff] %v686_v55  ;;  %v497_v2 = vadd.f32 %v496_v0, %v1205_v58  ;;  %v690_v3 = vadd.f32 %v689_v1, %v1207_v59 }
 0x159   :  { %832 = vst [vmem:[#allocation7 + $0x1e0] sm:$0xff] %v495_v62  ;;  %834 = vst [vmem:[#allocation7 + $0x1f0] sm:$0xff] %v688_v63 }
 0x15a   :  { %833 = vst [vmem:[#allocation7 + $0x1e8] sm:$0xff] %v497_v2  ;;  %835 = vst [vmem:[#allocation7 + $0x1f8] sm:$0xff] %v690_v3 }
 0x15c   :  { %v500_v4 = vpop.f32.mrb[32].mxu0  ;;  %v693_v5 = vpop.f32.mrb[32].mxu1 }
 0x15d   :  { %v501_v6 = vadd.f32 %v500_v4, %v1201_v56  ;;  %v694_v7 = vadd.f32 %v693_v5, %v1203_v57  ;;  %v502_v8 = vpop.f32.mrb[33].mxu0  ;;  %v695_v9 = vpop.f32.mrb[33].mxu1 }
 0x15e   :  { %v503_v10 = vadd.f32 %v502_v8, %v1205_v58  ;;  %v696_v11 = vadd.f32 %v695_v9, %v1207_v59  ;;  %v504_v12 = vpop.f32.mrb[34].mxu0  ;;  %v697_v13 = vpop.f32.mrb[34].mxu1 }
 0x15f   :  { %836 = vst [vmem:[#allocation7 + $0x200] sm:$0xff] %v501_v6  ;;  %838 = vst [vmem:[#allocation7 + $0x210] sm:$0xff] %v694_v7  ;;  %v505_v14 = vadd.f32 %v504_v12, %v1201_v56  ;;  %v698_v15 = vadd.f32 %v697_v13, %v1203_v57  ;;  %v506_v16 = vpop.f32.mrb[35].mxu0  ;;  %v699_v17 = vpop.f32.mrb[35].mxu1 }
 0x160   :  { %837 = vst [vmem:[#allocation7 + $0x208] sm:$0xff] %v503_v10  ;;  %839 = vst [vmem:[#allocation7 + $0x218] sm:$0xff] %v696_v11  ;;  %v507_v18 = vadd.f32 %v506_v16, %v1205_v58  ;;  %v700_v19 = vadd.f32 %v699_v17, %v1207_v59 }
 0x161   :  { %840 = vst [vmem:[#allocation7 + $0x220] sm:$0xff] %v505_v14  ;;  %842 = vst [vmem:[#allocation7 + $0x230] sm:$0xff] %v698_v15 }
 0x162   :  { %841 = vst [vmem:[#allocation7 + $0x228] sm:$0xff] %v507_v18  ;;  %843 = vst [vmem:[#allocation7 + $0x238] sm:$0xff] %v700_v19 }
 0x164   :  { %v510_v20 = vpop.f32.mrb[36].mxu0  ;;  %v703_v21 = vpop.f32.mrb[36].mxu1 }
 0x165   :  { %v511_v22 = vadd.f32 %v510_v20, %v1201_v56  ;;  %v704_v23 = vadd.f32 %v703_v21, %v1203_v57  ;;  %v512_v24 = vpop.f32.mrb[37].mxu0  ;;  %v705_v25 = vpop.f32.mrb[37].mxu1 }
 0x166   :  { %v513_v26 = vadd.f32 %v512_v24, %v1205_v58  ;;  %v706_v27 = vadd.f32 %v705_v25, %v1207_v59  ;;  %v514_v28 = vpop.f32.mrb[38].mxu0  ;;  %v707_v29 = vpop.f32.mrb[38].mxu1 }
 0x167   :  { %844 = vst [vmem:[#allocation7 + $0x240] sm:$0xff] %v511_v22  ;;  %846 = vst [vmem:[#allocation7 + $0x250] sm:$0xff] %v704_v23  ;;  %v515_v30 = vadd.f32 %v514_v28, %v1201_v56  ;;  %v708_v31 = vadd.f32 %v707_v29, %v1203_v57  ;;  %v516_v32 = vpop.f32.mrb[39].mxu0  ;;  %v709_v33 = vpop.f32.mrb[39].mxu1 }
 0x168   :  { %845 = vst [vmem:[#allocation7 + $0x248] sm:$0xff] %v513_v26  ;;  %847 = vst [vmem:[#allocation7 + $0x258] sm:$0xff] %v706_v27  ;;  %v517_v34 = vadd.f32 %v516_v32, %v1205_v58  ;;  %v710_v35 = vadd.f32 %v709_v33, %v1207_v59 }
 0x169   :  { %848 = vst [vmem:[#allocation7 + $0x260] sm:$0xff] %v515_v30  ;;  %850 = vst [vmem:[#allocation7 + $0x270] sm:$0xff] %v708_v31 }
 0x16a   :  { %849 = vst [vmem:[#allocation7 + $0x268] sm:$0xff] %v517_v34  ;;  %851 = vst [vmem:[#allocation7 + $0x278] sm:$0xff] %v710_v35 }
 0x16c   :  { %v520_v36 = vpop.f32.mrb[40].mxu0  ;;  %v713_v37 = vpop.f32.mrb[40].mxu1 }
 0x16d   :  { %v521_v38 = vadd.f32 %v520_v36, %v1201_v56  ;;  %v714_v39 = vadd.f32 %v713_v37, %v1203_v57  ;;  %v522_v40 = vpop.f32.mrb[41].mxu0  ;;  %v715_v41 = vpop.f32.mrb[41].mxu1 }
 0x16e   :  { %v523_v42 = vadd.f32 %v522_v40, %v1205_v58  ;;  %v716_v43 = vadd.f32 %v715_v41, %v1207_v59  ;;  %v524_v44 = vpop.f32.mrb[42].mxu0  ;;  %v717_v45 = vpop.f32.mrb[42].mxu1 }
 0x16f   :  { %852 = vst [vmem:[#allocation7 + $0x280] sm:$0xff] %v521_v38  ;;  %854 = vst [vmem:[#allocation7 + $0x290] sm:$0xff] %v714_v39  ;;  %v525_v46 = vadd.f32 %v524_v44, %v1201_v56  ;;  %v718_v47 = vadd.f32 %v717_v45, %v1203_v57  ;;  %v526_v48 = vpop.f32.mrb[43].mxu0  ;;  %v719_v49 = vpop.f32.mrb[43].mxu1 }
 0x170   :  { %853 = vst [vmem:[#allocation7 + $0x288] sm:$0xff] %v523_v42  ;;  %855 = vst [vmem:[#allocation7 + $0x298] sm:$0xff] %v716_v43  ;;  %v527_v50 = vadd.f32 %v526_v48, %v1205_v58  ;;  %v720_v51 = vadd.f32 %v719_v49, %v1207_v59 }
 0x171   :  { %856 = vst [vmem:[#allocation7 + $0x2a0] sm:$0xff] %v525_v46  ;;  %858 = vst [vmem:[#allocation7 + $0x2b0] sm:$0xff] %v718_v47 }
 0x172   :  { %857 = vst [vmem:[#allocation7 + $0x2a8] sm:$0xff] %v527_v50  ;;  %859 = vst [vmem:[#allocation7 + $0x2b8] sm:$0xff] %v720_v51 }
 0x174   :  { %v530_v52 = vpop.f32.mrb[44].mxu0  ;;  %v723_v53 = vpop.f32.mrb[44].mxu1 }
 0x175   :  { %v531_v54 = vadd.f32 %v530_v52, %v1201_v56  ;;  %v724_v55 = vadd.f32 %v723_v53, %v1203_v57  ;;  %v532_v60 = vpop.f32.mrb[45].mxu0  ;;  %v725_v61 = vpop.f32.mrb[45].mxu1 }
 0x176   :  { %v533_v62 = vadd.f32 %v532_v60, %v1205_v58  ;;  %v726_v63 = vadd.f32 %v725_v61, %v1207_v59  ;;  %v534_v0 = vpop.f32.mrb[46].mxu0  ;;  %v727_v1 = vpop.f32.mrb[46].mxu1 }
 0x177   :  { %860 = vst [vmem:[#allocation7 + $0x2c0] sm:$0xff] %v531_v54  ;;  %862 = vst [vmem:[#allocation7 + $0x2d0] sm:$0xff] %v724_v55  ;;  %v535_v2 = vadd.f32 %v534_v0, %v1201_v56  ;;  %v728_v3 = vadd.f32 %v727_v1, %v1203_v57  ;;  %v536_v4 = vpop.f32.mrb[47].mxu0  ;;  %v729_v5 = vpop.f32.mrb[47].mxu1 }
 0x178   :  { %861 = vst [vmem:[#allocation7 + $0x2c8] sm:$0xff] %v533_v62  ;;  %863 = vst [vmem:[#allocation7 + $0x2d8] sm:$0xff] %v726_v63  ;;  %v537_v6 = vadd.f32 %v536_v4, %v1205_v58  ;;  %v730_v7 = vadd.f32 %v729_v5, %v1207_v59 }
 0x179   :  { %864 = vst [vmem:[#allocation7 + $0x2e0] sm:$0xff] %v535_v2  ;;  %866 = vst [vmem:[#allocation7 + $0x2f0] sm:$0xff] %v728_v3 }
 0x17a   :  { %865 = vst [vmem:[#allocation7 + $0x2e8] sm:$0xff] %v537_v6  ;;  %867 = vst [vmem:[#allocation7 + $0x2f8] sm:$0xff] %v730_v7 }
 0x17c   :  { %v540_v8 = vpop.f32.mrb[48].mxu0  ;;  %v733_v9 = vpop.f32.mrb[48].mxu1 }
 0x17d   :  { %v541_v10 = vadd.f32 %v540_v8, %v1201_v56  ;;  %v734_v11 = vadd.f32 %v733_v9, %v1203_v57  ;;  %v542_v12 = vpop.f32.mrb[49].mxu0  ;;  %v735_v13 = vpop.f32.mrb[49].mxu1 }
 0x17e   :  { %v543_v14 = vadd.f32 %v542_v12, %v1205_v58  ;;  %v736_v15 = vadd.f32 %v735_v13, %v1207_v59  ;;  %v544_v16 = vpop.f32.mrb[50].mxu0  ;;  %v737_v17 = vpop.f32.mrb[50].mxu1 }
 0x17f   :  { %868 = vst [vmem:[#allocation7 + $0x300] sm:$0xff] %v541_v10  ;;  %870 = vst [vmem:[#allocation7 + $0x310] sm:$0xff] %v734_v11  ;;  %v545_v18 = vadd.f32 %v544_v16, %v1201_v56  ;;  %v738_v19 = vadd.f32 %v737_v17, %v1203_v57  ;;  %v546_v20 = vpop.f32.mrb[51].mxu0  ;;  %v739_v21 = vpop.f32.mrb[51].mxu1 }
 0x180   :  { %869 = vst [vmem:[#allocation7 + $0x308] sm:$0xff] %v543_v14  ;;  %871 = vst [vmem:[#allocation7 + $0x318] sm:$0xff] %v736_v15  ;;  %v547_v22 = vadd.f32 %v546_v20, %v1205_v58  ;;  %v740_v23 = vadd.f32 %v739_v21, %v1207_v59 }
 0x181   :  { %872 = vst [vmem:[#allocation7 + $0x320] sm:$0xff] %v545_v18  ;;  %874 = vst [vmem:[#allocation7 + $0x330] sm:$0xff] %v738_v19 }
 0x182   :  { %873 = vst [vmem:[#allocation7 + $0x328] sm:$0xff] %v547_v22  ;;  %875 = vst [vmem:[#allocation7 + $0x338] sm:$0xff] %v740_v23 }
 0x184   :  { %v550_v24 = vpop.f32.mrb[52].mxu0  ;;  %v743_v25 = vpop.f32.mrb[52].mxu1 }
 0x185   :  { %v551_v26 = vadd.f32 %v550_v24, %v1201_v56  ;;  %v744_v27 = vadd.f32 %v743_v25, %v1203_v57  ;;  %v552_v28 = vpop.f32.mrb[53].mxu0  ;;  %v745_v29 = vpop.f32.mrb[53].mxu1 }
 0x186   :  { %v553_v30 = vadd.f32 %v552_v28, %v1205_v58  ;;  %v746_v31 = vadd.f32 %v745_v29, %v1207_v59  ;;  %v554_v32 = vpop.f32.mrb[54].mxu0  ;;  %v747_v33 = vpop.f32.mrb[54].mxu1 }
 0x187   :  { %876 = vst [vmem:[#allocation7 + $0x340] sm:$0xff] %v551_v26  ;;  %878 = vst [vmem:[#allocation7 + $0x350] sm:$0xff] %v744_v27  ;;  %v555_v34 = vadd.f32 %v554_v32, %v1201_v56  ;;  %v748_v35 = vadd.f32 %v747_v33, %v1203_v57  ;;  %v556_v36 = vpop.f32.mrb[55].mxu0  ;;  %v749_v37 = vpop.f32.mrb[55].mxu1 }
 0x188   :  { %877 = vst [vmem:[#allocation7 + $0x348] sm:$0xff] %v553_v30  ;;  %879 = vst [vmem:[#allocation7 + $0x358] sm:$0xff] %v746_v31  ;;  %v557_v38 = vadd.f32 %v556_v36, %v1205_v58  ;;  %v750_v39 = vadd.f32 %v749_v37, %v1207_v59 }
 0x189   :  { %880 = vst [vmem:[#allocation7 + $0x360] sm:$0xff] %v555_v34  ;;  %882 = vst [vmem:[#allocation7 + $0x370] sm:$0xff] %v748_v35 }
 0x18a   :  { %881 = vst [vmem:[#allocation7 + $0x368] sm:$0xff] %v557_v38  ;;  %883 = vst [vmem:[#allocation7 + $0x378] sm:$0xff] %v750_v39 }
 0x18c   :  { %v560_v40 = vpop.f32.mrb[56].mxu0  ;;  %v753_v41 = vpop.f32.mrb[56].mxu1 }
 0x18d   :  { %v561_v42 = vadd.f32 %v560_v40, %v1201_v56  ;;  %v754_v43 = vadd.f32 %v753_v41, %v1203_v57  ;;  %v562_v44 = vpop.f32.mrb[57].mxu0  ;;  %v755_v45 = vpop.f32.mrb[57].mxu1 }
 0x18e   :  { %v563_v46 = vadd.f32 %v562_v44, %v1205_v58  ;;  %v756_v47 = vadd.f32 %v755_v45, %v1207_v59  ;;  %v564_v48 = vpop.f32.mrb[58].mxu0  ;;  %v757_v49 = vpop.f32.mrb[58].mxu1 }
 0x18f   :  { %884 = vst [vmem:[#allocation7 + $0x380] sm:$0xff] %v561_v42  ;;  %886 = vst [vmem:[#allocation7 + $0x390] sm:$0xff] %v754_v43  ;;  %v565_v50 = vadd.f32 %v564_v48, %v1201_v56  ;;  %v758_v51 = vadd.f32 %v757_v49, %v1203_v57  ;;  %v566_v52 = vpop.f32.mrb[59].mxu0  ;;  %v759_v53 = vpop.f32.mrb[59].mxu1 }
 0x190   :  { %885 = vst [vmem:[#allocation7 + $0x388] sm:$0xff] %v563_v46  ;;  %887 = vst [vmem:[#allocation7 + $0x398] sm:$0xff] %v756_v47  ;;  %v567_v54 = vadd.f32 %v566_v52, %v1205_v58  ;;  %v760_v55 = vadd.f32 %v759_v53, %v1207_v59 }
 0x191   :  { %888 = vst [vmem:[#allocation7 + $0x3a0] sm:$0xff] %v565_v50  ;;  %890 = vst [vmem:[#allocation7 + $0x3b0] sm:$0xff] %v758_v51 }
 0x192   :  { %889 = vst [vmem:[#allocation7 + $0x3a8] sm:$0xff] %v567_v54  ;;  %891 = vst [vmem:[#allocation7 + $0x3b8] sm:$0xff] %v760_v55 }
 0x194   :  { %v570_v60 = vpop.f32.mrb[60].mxu0  ;;  %v763_v61 = vpop.f32.mrb[60].mxu1 }
 0x195   :  { %v571_v62 = vadd.f32 %v570_v60, %v1201_v56  ;;  %v764_v63 = vadd.f32 %v763_v61, %v1203_v57  ;;  %v572_v0 = vpop.f32.mrb[61].mxu0  ;;  %v765_v1 = vpop.f32.mrb[61].mxu1 }
 0x196   :  { %v573_v2 = vadd.f32 %v572_v0, %v1205_v58  ;;  %v766_v3 = vadd.f32 %v765_v1, %v1207_v59  ;;  %v574_v4 = vpop.f32.mrb[62].mxu0  ;;  %v767_v5 = vpop.f32.mrb[62].mxu1 }
 0x197   :  { %892 = vst [vmem:[#allocation7 + $0x3c0] sm:$0xff] %v571_v62  ;;  %894 = vst [vmem:[#allocation7 + $0x3d0] sm:$0xff] %v764_v63  ;;  %v575_v6 = vadd.f32 %v574_v4, %v1201_v56  ;;  %v768_v7 = vadd.f32 %v767_v5, %v1203_v57  ;;  %v576_v8 = vpop.f32.mrb[63].mxu0  ;;  %v769_v9 = vpop.f32.mrb[63].mxu1 }
 0x198   :  { %893 = vst [vmem:[#allocation7 + $0x3c8] sm:$0xff] %v573_v2  ;;  %895 = vst [vmem:[#allocation7 + $0x3d8] sm:$0xff] %v766_v3  ;;  %v577_v10 = vadd.f32 %v576_v8, %v1205_v58  ;;  %v770_v11 = vadd.f32 %v769_v9, %v1207_v59 }
 0x199   :  { %896 = vst [vmem:[#allocation7 + $0x3e0] sm:$0xff] %v575_v6  ;;  %898 = vst [vmem:[#allocation7 + $0x3f0] sm:$0xff] %v768_v7 }
 0x19a   :  { %897 = vst [vmem:[#allocation7 + $0x3e8] sm:$0xff] %v577_v10  ;;  %899 = vst [vmem:[#allocation7 + $0x3f8] sm:$0xff] %v770_v11 }
 0x19b   :  { %1095 = shalt.err (!%p1092_p6)
}
 0x19c   :  { %s1096_s17 = scalar_lea.hbm %s1352_s3, 16384 }
 0x19d   :  { %p1097_p7 = scmp.ne.s32.totalorder %s1352_s3, %s1096_s17  ;;  %p1100_p8 = scmp.lt.u32.totalorder %s1096_s17, %s1352_s3 }
 0x19f   :  { %p1102_p9 = pnand %p1100_p8, %p1097_p7 }
 0x1a1   :  { %1105 = shalt.err (!%p1102_p9)
}
 0x1a2   :  { %s1120_s22 = smov 512   ;;  %s1121_s23 = smov 32  }
 0x1a3   :  { %911 = dma.vmem_to_hbm [thread:$0]  %s906_s13, 16384, %s1352_s3, [#allocation4], %s1120_s22, %s1120_s22, %s1121_s23  }
 0x1a4   :  { %1110 = dma.done.wait [#allocation4], 16384  }
 0x1a5   :  { %1111 = vsyncadd [#allocation4], 4294950912 }
 0x1a6   :  { %915 = vsyncpa [#allocation3], 1 }
 0x1a7   :  { %916 = vsyncpa [#allocation6], 1 }
 0x1a8   :  { %917 = vsyncpa [#allocation4], 1 }

</bundles_post_ra>
